<compile_context>
chip_gen: v6e
topology: v6e:2x2x1
jax: 0.10.0
libtpu: 0.0.40
codegen_flags: <defaults>
</compile_context>

<pallas_src>
import jax
import jax.numpy as jnp
from jax.experimental import pallas as pl
from jax.experimental.pallas import tpu as pltpu


def _relu6_hswishlike_kernel(x_ref, o_ref):
    x = x_ref[...]
    # v1 = ReLU6(x)
    v1 = jnp.minimum(jnp.maximum(x, 0.0), 6.0)
    # v2 = 3 + v1 ; clamp_min(v2, 0) is a no-op because v1 >= 0 -> v2 >= 3.
    # v4 = clamp_max(v2, 6)
    v4 = jnp.minimum(v1 + 3.0, 6.0)
    # v5 = v1 * v4 ; v6 = v5 / 6
    o_ref[...] = (v1 * v4) * (1.0 / 6.0)


_LANE_CANDIDATES = (1024, 512, 256, 128)
# ~4 MiB per input block -> in + out, double-buffered ~= 16 MiB live VMEM.
_TARGET_TILE_BYTES = 4 * 1024 * 1024
_VMEM_LIMIT_BYTES = 32 * 1024 * 1024
# Threshold below which an unaligned flat array just runs as one 1D block.
_SINGLE_BLOCK_BYTES = 8 * 1024 * 1024


def _sublane_for(dtype_bytes):
    # f32 -> 8, bf16/f16 -> 16, int8/fp8 -> 32 (packed sublanes).
    return max(8, 32 // max(1, dtype_bytes))


def _round_up(x, m):
    return ((x + m - 1) // m) * m


def _pick_lane(total, sublane):
    """Widest lane (multiple of 128) dividing total; prefer rows % sublane == 0."""
    for lane in _LANE_CANDIDATES:
        if total % lane == 0 and (total // lane) % sublane == 0:
            return lane
    for lane in _LANE_CANDIDATES:
        if total % lane == 0:
            return lane
    return None  # total not a multiple of 128


def _pick_block_rows(rows, lane, dtype_bytes, sublane):
    """Row-block targeting ~4 MiB tiles; multiple of `sublane` (or full extent)."""
    target = max(sublane, _TARGET_TILE_BYTES // (lane * dtype_bytes))
    target = max(sublane, (target // sublane) * sublane)
    if rows <= target:
        # Whole slab fits a single block.  Split into >= 2 blocks when there
        # is enough work, so v7x's second TensorCore streams half the rows
        # (no effect / no harm on single-TC v5e / v6e).
        if rows >= 2 * sublane:
            half = _round_up(pl.cdiv(rows, 2), sublane)
            return min(half, rows)
        return rows
    # Prefer an exact divisor near target (no masked partial last block), but
    # never search below target // 2 -- tiny blocks collapse throughput
    # (per-grid-step overhead dominates at ~32 KiB tiles).
    lo = max(sublane, ((target // 2) // sublane) * sublane)
    for br in range(target, lo - 1, -sublane):
        if rows % br == 0:
            return br
    return target  # masked partial last block; still ~4 MiB tiles


def _run_2d(x2d, rows, lane, dtype, dtype_bytes, sublane):
    block_rows = _pick_block_rows(rows, lane, dtype_bytes, sublane)
    grid_len = pl.cdiv(rows, block_rows)
    # NOTE: input_output_aliases={0: 0} would save the output allocation, but
    # x is not donated by the caller (it is reused for the reference check),
    # so XLA would insert a defensive copy; deliberately omitted.
    return pl.pallas_call(
        _relu6_hswishlike_kernel,
        out_shape=jax.ShapeDtypeStruct((rows, lane), dtype),
        grid=(grid_len,),
        in_specs=[pl.BlockSpec((block_rows, lane), lambda i: (i, 0))],
        out_specs=pl.BlockSpec((block_rows, lane), lambda i: (i, 0)),
        compiler_params=pltpu.CompilerParams(
            dimension_semantics=("parallel",),
            vmem_limit_bytes=_VMEM_LIMIT_BYTES,
        ),
        cost_estimate=pl.CostEstimate(
            flops=6 * rows * lane,
            bytes_accessed=2 * dtype_bytes * rows * lane,
            transcendentals=0,
        ),
    )(x2d)


def _run_1d_single_block(flat, dtype, dtype_bytes):
    # Full-extent 1D block (legal: block dim equals the array dim); used only
    # for small tensors whose length is not a multiple of 128.
    n = flat.shape[0]
    return pl.pallas_call(
        _relu6_hswishlike_kernel,
        out_shape=jax.ShapeDtypeStruct((n,), dtype),
        compiler_params=pltpu.CompilerParams(
            vmem_limit_bytes=_VMEM_LIMIT_BYTES,
        ),
        cost_estimate=pl.CostEstimate(
            flops=6 * n,
            bytes_accessed=2 * dtype_bytes * n,
            transcendentals=0,
        ),
    )(flat)


def model_forward(x):
    """Elementwise: relu6(x) * clamp(relu6(x)+3, 0, 6) / 6; NCHW in/out."""
    orig_shape = x.shape
    dtype = x.dtype
    dtype_bytes = jnp.dtype(dtype).itemsize
    sublane = _sublane_for(dtype_bytes)
    total = x.size

    flat = x.reshape(-1)  # metadata-only reshape

    lane = _pick_lane(total, sublane)
    if lane is not None:
        rows = total // lane
        out2d = _run_2d(flat.reshape(rows, lane), rows, lane, dtype,
                        dtype_bytes, sublane)
        return out2d.reshape(orig_shape)  # free metadata reshape

    # total is not a multiple of 128 (rare for conv activations).
    if total * dtype_bytes <= _SINGLE_BLOCK_BYTES:
        # Whole flat array as one full-extent 1D block: zero extra copies.
        return _run_1d_single_block(flat, dtype, dtype_bytes).reshape(orig_shape)

    # Large, unaligned: kernel on the 128-aligned prefix, plain jnp on the
    # <128-element tail (one output-sized concat; cheaper than pad + slice).
    main = total - (total % 128)
    lane = _pick_lane(main, sublane)
    rows = main // lane
    out_main = _run_2d(flat[:main].reshape(rows, lane), rows, lane, dtype,
                       dtype_bytes, sublane).reshape(-1)
    tail = flat[main:]
    v1 = jnp.clip(tail, 0.0, 6.0)
    out_tail = (v1 * jnp.minimum(v1 + 3.0, 6.0) * (1.0 / 6.0)).astype(dtype)
    return jnp.concatenate([out_main, out_tail]).reshape(orig_shape)


def _reference(x):
    v1 = jnp.clip(x, 0.0, 6.0)
    v4 = jnp.clip(v1 + 3.0, 0.0, 6.0)
    return v1 * v4 / 6.0


if __name__ == "__main__":
    key = jax.random.PRNGKey(0)
    # Small NCHW input consistent with the module's (1, 3, 224, 224) usage.
    x = jax.random.normal(key, (2, 4, 16, 16), dtype=jnp.float32)

    out = model_forward(x)
    out = jax.block_until_ready(out)

    ref = _reference(x)
    assert out.shape == x.shape
    assert jnp.allclose(out, ref, atol=1e-6, rtol=1e-6)

    print("KERNEL_OK")
</pallas_src>

<mosaic_0001>
module attributes {stable_mosaic.version = 11 : i64} {
  func.func @_relu6_hswishlike_kernel(%arg0: i32, %arg1: memref<8x256xf32, #tpu.memory_space<vmem>>, %arg2: memref<8x256xf32, #tpu.memory_space<vmem>>) attributes {dimension_semantics = [#tpu.dimension_semantics<parallel>], iteration_bounds = array<i64: 1>, scalar_prefetch = 0 : i64, scratch_operands = 0 : i64, tpu.core_type = #tpu.core_type<tc>, window_params = [{transform_indices = @transform_0, window_bounds = array<i64: 8, 256>}, {transform_indices = @transform_1, window_bounds = array<i64: 8, 256>}]} {
    %c0 = arith.constant 0 : index
    %c0_0 = arith.constant 0 : index
    %0 = vector.load %arg1[%c0, %c0_0] : memref<8x256xf32, #tpu.memory_space<vmem>>, vector<8x256xf32>
    %cst = arith.constant 0.000000e+00 : f32
    %1 = vector.broadcast %cst : f32 to vector<8x256xf32>
    %2 = arith.maximumf %0, %1 : vector<8x256xf32>
    %cst_1 = arith.constant 6.000000e+00 : f32
    %3 = vector.broadcast %cst_1 : f32 to vector<8x256xf32>
    %4 = arith.minimumf %2, %3 : vector<8x256xf32>
    %cst_2 = arith.constant 3.000000e+00 : f32
    %5 = vector.broadcast %cst_2 : f32 to vector<8x256xf32>
    %6 = arith.addf %4, %5 : vector<8x256xf32>
    %cst_3 = arith.constant 6.000000e+00 : f32
    %7 = vector.broadcast %cst_3 : f32 to vector<8x256xf32>
    %8 = arith.minimumf %6, %7 : vector<8x256xf32>
    %9 = arith.mulf %4, %8 : vector<8x256xf32>
    %cst_4 = arith.constant 0.166666672 : f32
    %10 = vector.broadcast %cst_4 : f32 to vector<8x256xf32>
    %11 = arith.mulf %9, %10 : vector<8x256xf32>
    %c0_5 = arith.constant 0 : index
    %c0_6 = arith.constant 0 : index
    %12 = vector.load %arg2[%c0_5, %c0_6] : memref<8x256xf32, #tpu.memory_space<vmem>>, vector<8x256xf32>
    tpu.vector_store %arg2[%c0_5, %c0_6], %11 {strides = array<i32>} : memref<8x256xf32, #tpu.memory_space<vmem>>, vector<8x256xf32>,
    return
  }
  func.func @transform_0(%arg0: i32) -> (i32, i32) {
    %c0_i32 = arith.constant 0 : i32
    %c0_i32_0 = arith.constant 0 : i32
    return %arg0, %c0_i32 : i32, i32
  }
  func.func @transform_1(%arg0: i32) -> (i32, i32) {
    %c0_i32 = arith.constant 0 : i32
    %c0_i32_0 = arith.constant 0 : i32
    return %arg0, %c0_i32 : i32, i32
  }
}

</mosaic_0001>

<bundles_post_ra>
// kernel: tpu_custom_call.1
= control target key start
LH: loop header
LB: loop body
LE: loop exit
PB: predicated region body
PF: predicated region fallthrough
CT: control target
= control target key end

     0   :  { %6 = vsyncpa [#allocation3], 0  ;;  %s116_s0 = inlined_call_operand.hbm [shape: f32[8,256], index: 0, kind: input, shape index: {}]   ;;  %s117_s1 = inlined_call_operand.hbm [shape: f32[8,256], index: 1, kind: output, shape index: {}]  }
   0x1   :  { %7 = vsyncpa [#allocation4], 0  ;;  %s98_s6 = smov [#allocation2]  }
   0x2   :  { %s14_s7 = sshll.u32 %s98_s6, 4  ;;  %s15_s7 = int_to_ptr.vmem [resolvable:$true] %s14_s7 }
   0x3   :  { %s62_s8 = scalar_lea.vmem %s15_s7, 256  ;;  %p67_p1 = scmp.lt.s32.totalorder %s15_s7, %s15_s7 }
   0x4   :  { %p63_p0 = scmp.ne.s32.totalorder %s15_s7, %s62_s8  ;;  %p68_p2 = scmp.lt.s32.totalorder %s62_s8, %s62_s8 }
   0x6   :  { %p69_p3 = por %p68_p2, %p67_p1 }
   0x8   :  { %p70_p4 = pnand %p69_p3, %p63_p0 }
   0xa   :  { %73 = shalt.err (!%p70_p4)
}
   0xb   :  { %17 = dma.hbm_to_vmem [thread:$0]  %s116_s0, 256, %s15_s7, [#allocation3]  }
   0xc   :  { %94 = dma.done.wait [#allocation3], 256  }
   0xd   :  { %95 = vsyncadd [#allocation3], 4294967040  ;;  %v21_v0 = vld [vmem:[#allocation2] sm:$0xff]  ;;  %v22_v1 = vld [vmem:[#allocation2 + $0x8] sm:$0xff]  ;;  %s99_s11 = smov [#allocation5]  }
   0xe   :  { %v23_v2 = vmax.f32 %v21_v0, 0.0  ;;  %v24_v3 = vmax.f32 %v22_v1, 0.0  ;;  %s43_s12 = sshll.u32 %s99_s11, 4  ;;  %s44_s12 = int_to_ptr.vmem [resolvable:$true] %s43_s12 }
   0xf   :  { %s74_s0 = scalar_lea.vmem %s44_s12, 256  ;;  %p79_p6 = scmp.lt.s32.totalorder %s44_s12, %s44_s12 }
  0x10   :  { %v25_v4 = vmin.f32 %v23_v2, 6.0  ;;  %v26_v5 = vmin.f32 %v24_v3, 6.0  ;;  %p75_p5 = scmp.ne.s32.totalorder %s44_s12, %s74_s0  ;;  %p80_p7 = scmp.lt.s32.totalorder %s74_s0, %s74_s0 }
  0x12   :  { %v27_v6 = vadd.f32 3.0, %v25_v4  ;;  %v28_v7 = vadd.f32 3.0, %v26_v5  ;;  %p81_p8 = por %p80_p7, %p79_p6 }
  0x14   :  { %v29_v8 = vmin.f32 %v27_v6, 6.0  ;;  %v30_v9 = vmin.f32 %v28_v7, 6.0  ;;  %p82_p9 = pnand %p81_p8, %p75_p5 }
  0x16   :  { %v31_v10 = vmul.f32 %v29_v8, %v25_v4  ;;  %v32_v11 = vmul.f32 %v30_v9, %v26_v5 }
  0x18   :  { %v33_v12 = vmul.f32 0.16666667, %v31_v10  ;;  %v34_v13 = vmul.f32 0.16666667, %v32_v11 }
  0x1a   :  { %35 = vst [vmem:[#allocation5] sm:$0xff] %v33_v12  ;;  %36 = vst [vmem:[#allocation5 + $0x8] sm:$0xff] %v34_v13 }
  0x1b   :  { %85 = shalt.err (!%p82_p9)
}
  0x1c   :  { %46 = dma.vmem_to_hbm [thread:$0]  %s44_s12, 256, %s117_s1, [#allocation4]  }
  0x1d   :  { %96 = dma.done.wait [#allocation4], 256  }
  0x1e   :  { %97 = vsyncadd [#allocation4], 4294967040 }
  0x1f   :  { %50 = vsyncpa [#allocation3], 1 }
  0x20   :  { %51 = vsyncpa [#allocation4], 1 }

</bundles_post_ra>
